<compile_context>
chip_gen: v6e
topology: v6e:2x2x1
jax: 0.10.0
libtpu: 0.0.40
codegen_flags: <defaults>
</compile_context>

<pallas_src>
import jax
import jax.numpy as jnp
from jax import lax
from jax.experimental import pallas as pl
from jax.experimental.pallas import tpu as pltpu

CIN = 3            # VGG16 conv1_1 input channels
COUT = 64          # VGG16 conv1_1 output channels
KH = KW = 3        # kernel size
PAD = 1            # "same" padding
KDIM = KH * KW * CIN   # 27 im2col rows
KPAD = 32              # K padded to a sublane-friendly size


def _conv3x3_relu_kernel(x_ref, w_ref, b_ref, o_ref):
    # x_ref: (1, KPAD, TP)   bf16 im2col patches, TP = TILE_H * W pixels
    # w_ref: (COUT, KPAD)    bf16 weights (row: out channel, col: (dy, dx, cin))
    # b_ref: (COUT, 1)       f32 bias
    # o_ref: (1, COUT, TP)   f32 output slab (lane dim = TP -> lane-dense store)
    acc = jnp.dot(w_ref[...], x_ref[0], preferred_element_type=jnp.float32)
    o_ref[0] = jnp.maximum(acc + b_ref[...], 0.0)   # bias + ReLU in f32


def _choose_tile_h(H, W):
    """Largest row-tile TH dividing H whose double-buffered blocks fit a
    conservative VMEM budget (safe on v5e/v6e/v7x) while keeping the pixel
    axis a multiple of 128 lanes (or the full image)."""
    budget = 12 * 1024 * 1024                  # bytes, double-buffered blocks
    per_pixel = COUT * 4 + KPAD * 2            # f32 output + bf16 input
    cands = [th for th in range(1, H + 1)
             if H % th == 0 and (th == H or (th * W) % 128 == 0)]
    fits = [th for th in cands if 2 * th * W * per_pixel <= budget]
    return max(fits) if fits else min(cands)


def _im2col_nchw(x_nchw):
    """(N, CIN, H, W) f32 -> (N, KPAD, H*W) bf16, channel order (dy, dx, cin)."""
    N, C, H, W = x_nchw.shape
    x_pad = jnp.pad(x_nchw, ((0, 0), (0, 0), (PAD, PAD), (PAD, PAD)))
    taps = []
    for dy in range(KH):
        for dx in range(KW):
            taps.append(x_pad[:, :, dy:dy + H, dx:dx + W])    # (N, CIN, H, W)
    patches = jnp.concatenate(taps, axis=1)                   # (N, 27, H, W)
    patches = jnp.pad(patches, ((0, 0), (0, KPAD - KDIM), (0, 0), (0, 0)))
    return patches.astype(jnp.bfloat16).reshape(N, KPAD, H * W)


def conv3x3_relu_nchw(x_nchw, w_oihw, bias, *, tile_h=None):
    """Conv2d(3, 64, 3, stride=1, padding=1) + ReLU. NCHW in / NCHW out."""
    N, C, H, W = x_nchw.shape
    assert C == CIN
    th = _choose_tile_h(H, W) if tile_h is None else tile_h
    assert H % th == 0 and (th == H or (th * W) % 128 == 0)
    tp = th * W                                               # pixels per tile

    patches = _im2col_nchw(x_nchw.astype(jnp.float32))        # (N, KPAD, H*W)
    # OIHW -> rows: out channel, cols: (dy, dx, cin); pad K 27 -> 32; bf16 MXU.
    w_t = jnp.transpose(w_oihw, (0, 2, 3, 1)).reshape(COUT, KDIM)
    w_t = jnp.pad(w_t, ((0, 0), (0, KPAD - KDIM))).astype(jnp.bfloat16)
    b2d = bias.reshape(COUT, 1).astype(jnp.float32)

    y = pl.pallas_call(
        _conv3x3_relu_kernel,
        out_shape=jax.ShapeDtypeStruct((N, COUT, H * W), jnp.float32),
        grid_spec=pltpu.PrefetchScalarGridSpec(
            num_scalar_prefetch=0,
            grid=(N, H // th),
            in_specs=[
                pl.BlockSpec((1, KPAD, tp), lambda n, t: (n, 0, t)),
                pl.BlockSpec((COUT, KPAD), lambda n, t: (0, 0)),
                pl.BlockSpec((COUT, 1), lambda n, t: (0, 0)),
            ],
            out_specs=pl.BlockSpec((1, COUT, tp), lambda n, t: (n, 0, t)),
        ),
        compiler_params=pltpu.CompilerParams(
            dimension_semantics=("parallel", "parallel"),
            vmem_limit_bytes=32 * 1024 * 1024),
    )(patches, w_t, b2d)

    # Free row-major split of the pixel axis back to (H, W); no transpose.
    return y.reshape(N, COUT, H, W)


def vgg16_feature_extractor_forward(image_nchw, w_oihw, bias, *, tile_h=None):
    """Mirrors VGG16FeatureExtractor.forward: returns results[1:], i.e. a
    single-element list [relu(conv1_1(image))] in NCHW."""
    y = conv3x3_relu_nchw(image_nchw, w_oihw, bias, tile_h=tile_h)
    return [y]
    # TODO(synk): enc_2..enc_5 are constructed in __init__ but never executed
    # by forward (loop is `for i in range(1)`), so they are intentionally omitted.


if __name__ == "__main__":
    key = jax.random.PRNGKey(0)
    k_img, k_w, k_b = jax.random.split(key, 3)

    # Small, forward-consistent shapes: batch=2, 3 input channels (VGG), 16x16.
    image = jax.random.normal(k_img, (2, CIN, 16, 16), dtype=jnp.float32)
    # Deterministic synthetic parameters matching Conv2d(3, 64, 3) shapes.
    w = jax.random.normal(k_w, (COUT, CIN, KH, KW), dtype=jnp.float32) * 0.1
    b = jax.random.normal(k_b, (COUT,), dtype=jnp.float32) * 0.1

    # tile_h=8 -> grid (2, 2); pixel blocks of 8*16 = 128 lanes (lane-dense).
    outs = vgg16_feature_extractor_forward(image, w, b, tile_h=8)
    out = jax.block_until_ready(outs[0])
    assert out.shape == (2, COUT, 16, 16)

    # Reference: XLA conv on the same bf16-rounded operands (kernel feeds bf16
    # to the MXU with f32 accumulation), f32 bias + ReLU.
    xb = image.astype(jnp.bfloat16).astype(jnp.float32)
    wb = w.astype(jnp.bfloat16).astype(jnp.float32)
    ref = lax.conv_general_dilated(
        xb, wb, window_strides=(1, 1), padding="SAME",
        dimension_numbers=("NCHW", "OIHW", "NCHW"),
        precision=lax.Precision.HIGHEST)
    ref = jnp.maximum(ref + b[None, :, None, None], 0.0)
    assert jnp.allclose(out, ref, atol=1e-3, rtol=1e-3)

    # Also exercise the automatic tile chooser path.
    out_auto = jax.block_until_ready(
        vgg16_feature_extractor_forward(image, w, b)[0])
    assert jnp.allclose(out_auto, ref, atol=1e-3, rtol=1e-3)

    print("KERNEL_OK")
</pallas_src>

<mosaic_0001>
module attributes {stable_mosaic.version = 11 : i64} {
  func.func @_conv3x3_relu_kernel(%arg0: i32, %arg1: i32, %arg2: memref<1x32x128xbf16, #tpu.memory_space<vmem>>, %arg3: memref<64x32xbf16, #tpu.memory_space<vmem>>, %arg4: memref<64x1xf32, #tpu.memory_space<vmem>>, %arg5: memref<1x64x128xf32, #tpu.memory_space<vmem>>) attributes {dimension_semantics = [#tpu.dimension_semantics<parallel>, #tpu.dimension_semantics<parallel>], iteration_bounds = array<i64: 2, 2>, scalar_prefetch = 0 : i64, scratch_operands = 0 : i64, tpu.core_type = #tpu.core_type<tc>, window_params = [{transform_indices = @transform_0, window_bounds = array<i64: 1, 32, 128>}, {pipeline_mode = #tpu.pipeline_mode<synchronous>, transform_indices = @transform_1, window_bounds = array<i64: 64, 32>}, {pipeline_mode = #tpu.pipeline_mode<synchronous>, transform_indices = @transform_2, window_bounds = array<i64: 64, 1>}, {transform_indices = @transform_3, window_bounds = array<i64: 1, 64, 128>}]} {
    %c0 = arith.constant 0 : index
    %c0_0 = arith.constant 0 : index
    %0 = vector.load %arg3[%c0, %c0_0] : memref<64x32xbf16, #tpu.memory_space<vmem>>, vector<64x32xbf16>
    %c0_1 = arith.constant 0 : index
    %c0_2 = arith.constant 0 : index
    %c0_3 = arith.constant 0 : index
    %1 = vector.load %arg2[%c0_1, %c0_2, %c0_3] : memref<1x32x128xbf16, #tpu.memory_space<vmem>>, vector<1x32x128xbf16>
    %2 = vector.shape_cast %1 : vector<1x32x128xbf16> to vector<32x128xbf16>
    %cst = arith.constant dense<0.000000e+00> : vector<64x128xf32>
    %3 = tpu.matmul %0, %2, %cst {dimension_numbers = #tpu.dot_dimension_numbers<[1], [0], [0], [1], [0, 0, 1, 1], [], []>} : vector<64x32xbf16>, vector<32x128xbf16>, vector<64x128xf32> -> vector<64x128xf32>
    %c0_4 = arith.constant 0 : index
    %c0_5 = arith.constant 0 : index
    %4 = vector.load %arg4[%c0_4, %c0_5] : memref<64x1xf32, #tpu.memory_space<vmem>>, vector<64x1xf32>
    %5 = vector.broadcast %4 : vector<64x1xf32> to vector<64x128xf32>
    %6 = arith.addf %3, %5 : vector<64x128xf32>
    %cst_6 = arith.constant 0.000000e+00 : f32
    %7 = vector.broadcast %cst_6 : f32 to vector<64x128xf32>
    %8 = arith.maximumf %6, %7 : vector<64x128xf32>
    %c0_7 = arith.constant 0 : index
    %c0_8 = arith.constant 0 : index
    %c0_9 = arith.constant 0 : index
    %9 = vector.load %arg5[%c0_7, %c0_8, %c0_9] : memref<1x64x128xf32, #tpu.memory_space<vmem>>, vector<1x64x128xf32>
    %10 = vector.shape_cast %9 : vector<1x64x128xf32> to vector<64x128xf32>
    %11 = vector.shape_cast %8 : vector<64x128xf32> to vector<1x64x128xf32>
    tpu.vector_store %arg5[%c0_7, %c0_8, %c0_9], %11 {strides = array<i32>} : memref<1x64x128xf32, #tpu.memory_space<vmem>>, vector<1x64x128xf32>,
    return
  }
  func.func @transform_0(%arg0: i32, %arg1: i32) -> (i32, i32, i32) {
    %c0_i32 = arith.constant 0 : i32
    %c0_i32_0 = arith.constant 0 : i32
    return %arg0, %c0_i32, %arg1 : i32, i32, i32
  }
  func.func @transform_1(%arg0: i32, %arg1: i32) -> (i32, i32) {
    %c0_i32 = arith.constant 0 : i32
    %c0_i32_0 = arith.constant 0 : i32
    %c0_i32_1 = arith.constant 0 : i32
    return %c0_i32, %c0_i32_0 : i32, i32
  }
  func.func @transform_2(%arg0: i32, %arg1: i32) -> (i32, i32) {
    %c0_i32 = arith.constant 0 : i32
    %c0_i32_0 = arith.constant 0 : i32
    %c0_i32_1 = arith.constant 0 : i32
    return %c0_i32, %c0_i32_0 : i32, i32
  }
  func.func @transform_3(%arg0: i32, %arg1: i32) -> (i32, i32, i32) {
    %c0_i32 = arith.constant 0 : i32
    %c0_i32_0 = arith.constant 0 : i32
    return %arg0, %c0_i32, %arg1 : i32, i32, i32
  }
}

</mosaic_0001>

<bundles_post_ra>
// kernel: tpu_custom_call.1
= control target key start
LH: loop header
LB: loop body
LE: loop exit
PB: predicated region body
PF: predicated region fallthrough
CT: control target
= control target key end

     0   :  { %8 = vsyncpa [#allocation4], 0  ;;  %s966_s0 = inlined_call_operand.vmem [shape: bf16[2,32,256], index: 0, kind: input, shape index: {}]   ;;  %s967_s1 = inlined_call_operand.vmem [shape: bf16[64,32], index: 1, kind: input, shape index: {}]   ;;  %s968_s2 = inlined_call_operand.vmem [shape: f32[64,1], index: 2, kind: input, shape index: {}]   ;;  %s969_s3 = inlined_call_operand.hbm [shape: f32[2,64,256], index: 3, kind: output, shape index: {}]  }
   0x1   :  { %10 = vsyncpa [#allocation4 + $0x1], 0  ;;  %s776_s12 = smov 0   ;;  %s778_s13 = smov 0  }
   0x2   :  { %s780_s14 = smov 0   ;;  %s782_s15 = smov 0  }
   0x3   :  { %s784_s16 = smov 0   ;;  %s786_s17 = smov 0  }
   0x4   :  { %s788_s18 = smov 0   ;;  %s790_s19 = smov 0  }
   0x5 LB: > { %s527_s20 = sadd.s32 4294967295, %s749_s19   ;;  %s528_s21 = sadd.s32 4294967294, %s749_s19   ;;  %s749_s19 = sphi %s790_s19, %s16_s19   ;;  %s745_s18 = sphi %s788_s18, %s979_s18   ;;  %s741_s17 = sphi %s786_s17, %s978_s17   ;;  %s737_s16 = sphi %s784_s16, %s977_s16   ;;  %s733_s15 = sphi %s782_s15, %s976_s15   ;;  %s729_s14 = sphi %s780_s14, %s975_s14   ;;  %s725_s13 = sphi %s778_s13, %s974_s13   ;;  %s721_s12 = sphi %s776_s12, %s973_s12  }
   0x6   : > { %s25_s22 = sadd.s32 1, %s741_s17  ;;  %s28_s23 = sadd.s32 1, %s745_s18 }
   0x7   : > { %p26_p0 = scmp.ge.s32.totalorder %s25_s22, 2  ;;  %p44_p1 = scmp.ne.s32.totalorder %s729_s14, %s725_s13 }
   0x8   : > { %p45_p2 = scmp.eq.s32.totalorder %s749_s19, 0  ;;  %p118_p5 = scmp.eq.s32.totalorder %s527_s20, 3 }
   0x9   : > { %s981_s22 = smov (%p26_p0, %s25_s22), 0  ;;  %s983_s23 = smov (!%p26_p0, %s28_s23), %s745_s18 }
   0xa   : > { %s33_s24 = ssub.s32 %s741_s17, %s981_s22  ;;  %p828_p3 = por %p45_p2, %p44_p1 }
   0xb   : > { %p30_p4 = scmp.ge.s32.totalorder %s983_s23, 2  ;;  %p123_p6 = scmp.ne.s32.totalorder %s725_s13, %s721_s12 }
   0xc   : > { %p124_p7 = scmp.eq.s32.totalorder %s528_s21, 3  ;;  %p836_p8 = por %p118_p5, %p44_p1 }
   0xd   : > { %s985_s23 = smov (%p30_p4, %s983_s23), 0  ;;  %s37_s30 = sadd.s32 1, %s729_s14 }
   0xe   : > { %p840_p9 = por %p124_p7, %p123_p6  ;;  %s32_s28 = ssub.s32 %s745_s18, %s985_s23 }
   0xf   : > { %s34_s29 = sor.u32 %s33_s24, %s32_s28  ;;  %p530_p11 = scmp.ge.s32.totalorder %s749_s19, 4 }
  0x10   : > { %p35_p10 = scmp.eq.s32.totalorder %s34_s29, 0 }
  0x11   : > { %146 = sbr.rel (%p530_p11) target bundleno = 30 (0x1e), region = 24 }
  0x12   : > { %s848_s4 = scalar_select %p35_p10, %s729_s14, %s37_s30  }
  0x16   : > { %149 = sbr.rel (!%p828_p3) target bundleno = 30 (0x1e), region = 28  ;;  %s151_s5 = sand.u32 (%p828_p3), 1, %s729_s14  }
  0x17   : > { %s532_s6 = sshll.u32 (%p828_p3), %s745_s18, 3  ;;  %s531_s7 = sshll.u32 (%p828_p3), %s151_s5, 4 }
  0x18   : > { %s155_s8 = sadd.s32 (%p828_p3), %s741_s17, %s532_s6  ;;  %s153_s21 = scalar_lea.vmem (%p828_p3), [#allocation2], %s531_s7 }
  0x19   : > { %s533_s9 = sshll.u32 (%p828_p3), %s155_s8, 2 }
  0x1a   : > { %s157_s20 = scalar_lea.vmem (%p828_p3), %s966_s0, %s533_s9 }
  0x1b   : > { %v174_v0 = vld [vmem:[%s157_s20] sm:$0xf]  ;;  %v176_v1 = vld [vmem:[%s157_s20 + $0x8] sm:$0xf]  ;;  %v178_v2 = vld [vmem:[%s157_s20 + $0x10] sm:$0xf] }
  0x1c   : > { %175 = vst [vmem:[%s153_s21] sm:$0xf] %v174_v0  ;;  %177 = vst [vmem:[%s153_s21 + $0x4] sm:$0xf] %v176_v1  ;;  %v180_v3 = vld [vmem:[%s157_s20 + $0x18] sm:$0xf] }
  0x1d   : > { %179 = vst [vmem:[%s153_s21 + $0x8] sm:$0xf] %v178_v2  ;;  %181 = vst [vmem:[%s153_s21 + $0xc] sm:$0xf] %v180_v3 }
  0x1e PF: > { %p534_p12 = scmp.ge.s32.totalorder %s749_s19, 1  ;;  %p212_p13 = scmp.lt.s32.totalorder %s749_s19, 5 }
  0x20   : > { %p213_p0 = pnand %p534_p12, %p212_p13 }
  0x21   : > { %s862_s24 = sand.u32 (!%p213_p0), 1, %s725_s13   ;;  %s548_s28 = sshll.u32 (!%p213_p0), %s737_s16, 4 }
  0x22   : > { %216 = sbr.rel (%p213_p0) target bundleno = 267 (0x10b), region = 69  ;;  %s535_s29 = sshll.u32 (!%p213_p0), %s862_s24, 4 }
  0x23   : > { %s221_s6 = scalar_lea.vmem (!%p213_p0), [#allocation2], %s535_s29  ;;  %s536_s25 = sshll.u32 (!%p213_p0), %s862_s24, 6 }
  0x24   : > { %s441_s29 = sadd.s32 (!%p213_p0), %s733_s15, %s548_s28  ;;  %s241_s30 = scalar_lea.vmem (!%p213_p0), [#allocation3], %s536_s25 }
  0x25   : > { %s444_s5 = sshll.u32 (!%p213_p0), %s241_s30, 4  ;;  %s549_s16 = sshll.u32 (!%p213_p0), %s441_s29, 7  ;;  %s908_s5 = int_to_ptr.vmem [resolvable:$true] %s444_s5 }
  0x26   : > { %s913_s7 = scalar_lea.hbm (!%p213_p0), %s969_s3, %s549_s16  ;;  %s430_s8 = scalar_lea.sflag (!%p213_p0), [#allocation4], %s862_s24 }
  0x27   : > { %v653_v4 = vld [vmem:[%s967_s1] sm:$0xff]   ;;  %vm335_vm0 = vcmask 261120   ;;  %v654_v5 = vld [vmem:[%s967_s1 + $0x10] sm:$0xff]   ;;  %v651_v6 = vld [vmem:[%s221_s6 + $0x8] sm:$0xff]   ;;  %v751_v10 = vmov 0   ;;  %s657_s9 = scalar_lea.vmem %s908_s5, 1024 }
  0x28   : > { %562 = vmatprep.mubr.msk.bf16.mxu0 %vm335_vm0, %v653_v4  ;;  %566 = vmatprep.mubr.msk.bf16.mxu1 %vm335_vm0, %v654_v5  ;;  %v652_v7 = vld [vmem:[%s221_s6] sm:$0xff]   ;;  %v655_v11 = vld [vmem:[%s967_s1 + $0x8] sm:$0xff]   ;;  %v656_v12 = vld [vmem:[%s967_s1 + $0x18] sm:$0xff]   ;;  %p658_p1 = scmp.ne.s32.totalorder %s908_s5, %s657_s9  ;;  %s752_s10 = smov [#allocation3]  }
  0x29   : > { %558 = vmatprep.subr.bf16.mxu0 %v651_v6  ;;  %570 = vmatprep.subr.bf16.mxu1 %v651_v6  ;;  %v257_v8 = vld [vmem:[%s968_s2 + $0x10] sm:$0xff]  ;;  %v255_v9 = vld [vmem:[%s968_s2] sm:$0xff]  ;;  %v258_v13 = vld [vmem:[%s968_s2 + $0x18] sm:$0xff]  ;;  %s661_s11 = sshll.u32 %s752_s10, 4  ;;  %s662_s11 = int_to_ptr.vmem [resolvable:$false] %s661_s11 }
  0x2a   : > { %559 = vmatpush3.bf16.msra.mxu0 %v651_v6  ;;  %572 = vmatpush3.bf16.msra.mxu1 %v651_v6  ;;  %v256_v14 = vld [vmem:[%s968_s2 + $0x8] sm:$0xff]  ;;  %v259_v16 = vld [vmem:[%s968_s2 + $0x20] sm:$0xff]  ;;  %v262_v17 = vld [vmem:[%s968_s2 + $0x38] sm:$0xff]  ;;  %p659_p2 = pnand %p658_p1, %p836_p8  ;;  %s663_s20 = scalar_lea.vmem %s662_s11, 2048 }
  0x2b   : > { %560 = vmatprep.subr.bf16.mxu0 %v652_v7  ;;  %571 = vmatprep.subr.bf16.mxu1 %v652_v7  ;;  %v260_v15 = vld [vmem:[%s968_s2 + $0x28] sm:$0xff]  ;;  %v261_v18 = vld [vmem:[%s968_s2 + $0x30] sm:$0xff]  ;;  %p664_p4 = scmp.lt.s32.totalorder %s908_s5, %s662_s11  ;;  %p665_p5 = scmp.lt.s32.totalorder %s663_s20, %s657_s9 }
  0x2c   : > { %650 = vset.pattern.permute.xlu1 %v751_v10  ;;  %649 = vset.pattern.permute.xlu0 %v751_v10  ;;  %p660_p3 = pneg %p659_p2 }
  0x2d   : > { %275 = vperm.xlu1 %650, %v257_v8   ;;  %265 = vperm.xlu0 %649, %v255_v9   ;;  %p666_p6 = por %p665_p5, %p664_p4 }
  0x2e   : > { %561 = vmatpush3.bf16.msra.mxu0 %v652_v7  ;;  %573 = vmatpush3.bf16.msra.mxu1 %v652_v7 }
  0x2f   : > { %p667_p7 = pnand %p666_p6, %p660_p3 }
  0x31   : > { %563 = vmatmul.mubr.msk.bf16.vlgmr.msra.gmra.mxu0 %vm335_vm0, %v655_v11  ;;  %567 = vmatmul.mubr.msk.bf16.vlgmr.msra.gmra.mxu1 %vm335_vm0, %v656_v12 }
  0x32   : > { %280 = vperm.xlu1 %650, %v258_v13   ;;  %270 = vperm.xlu0 %649, %v256_v14  }
  0x36   : > { %290 = vperm.xlu1 %650, %v260_v15   ;;  %285 = vperm.xlu0 %649, %v259_v16  }
  0x3a   : > { %300 = vperm.xlu1 %650, %v262_v17   ;;  %295 = vperm.xlu0 %649, %v261_v18  }
  0xa8   : > { %v266_v19 = vpop.permute.xlu0 %265  ;;  %v276_v20 = vpop.permute.xlu1 %275 }
  0xad   : > { %v271_v21 = vpop.permute.xlu0 %270  ;;  %v281_v22 = vpop.permute.xlu1 %280 }
  0xb1   : > { %v286_v23 = vpop.permute.xlu0 %285  ;;  %v291_v24 = vpop.permute.xlu1 %290 }
  0xb5   : > { %v296_v25 = vpop.permute.xlu0 %295  ;;  %v301_v32 = vpop.permute.xlu1 %300 }
  0xf1   : > { %v564_v26 = vpop.f32.mrf.mxu0  ;;  %v568_v27 = vpop.f32.mrf.mxu1 }
  0xf2   : > { %v391_v28 = vadd.f32 %v564_v26, %v276_v20  ;;  %v407_v29 = vadd.f32 %v568_v27, %v296_v25 }
  0xf3   : > { %v382_v30 = vpop.f32.mrf.mxu0  ;;  %v398_v31 = vpop.f32.mrf.mxu1 }
  0xf4   : > { %v415_v33 = vmax.f32 %v391_v28, 0.0  ;;  %v419_v34 = vmax.f32 %v407_v29, 0.0  ;;  %v383_v35 = vadd.f32 %v382_v30, %v266_v19  ;;  %v399_v36 = vadd.f32 %v398_v31, %v286_v23 }
  0xf5   : > { %v565_v37 = vpop.f32.mrf.mxu0  ;;  %v569_v38 = vpop.f32.mrf.mxu1 }
  0xf6   : > { %423 = vst [vmem:[%s241_s30 + $0x10] sm:$0xff] %v415_v33  ;;  %427 = vst [vmem:[%s241_s30 + $0x30] sm:$0xff] %v419_v34  ;;  %v413_v39 = vmax.f32 %v383_v35, 0.0  ;;  %v417_v40 = vmax.f32 %v399_v36, 0.0  ;;  %v394_v41 = vadd.f32 %v565_v37, %v281_v22  ;;  %v410_v42 = vadd.f32 %v569_v38, %v301_v32 }
  0xf7   : > { %v385_v43 = vpop.f32.mrf.mxu0  ;;  %v401_v44 = vpop.f32.mrf.mxu1 }
  0xf8   : > { %421 = vst [vmem:[%s241_s30] sm:$0xff] %v413_v39  ;;  %425 = vst [vmem:[%s241_s30 + $0x20] sm:$0xff] %v417_v40  ;;  %v416_v45 = vmax.f32 %v394_v41, 0.0  ;;  %v420_v46 = vmax.f32 %v410_v42, 0.0  ;;  %v386_v47 = vadd.f32 %v385_v43, %v271_v21  ;;  %v402_v48 = vadd.f32 %v401_v44, %v291_v24 }
  0xfa   : > { %424 = vst [vmem:[%s241_s30 + $0x18] sm:$0xff] %v416_v45  ;;  %428 = vst [vmem:[%s241_s30 + $0x38] sm:$0xff] %v420_v46  ;;  %v414_v49 = vmax.f32 %v386_v47, 0.0  ;;  %v418_v50 = vmax.f32 %v402_v48, 0.0 }
  0xfc   : > { %422 = vst [vmem:[%s241_s30 + $0x8] sm:$0xff] %v414_v49  ;;  %426 = vst [vmem:[%s241_s30 + $0x28] sm:$0xff] %v418_v50 }
  0xfd   : > { %670 = shalt.err (!%p667_p7)
}
  0xfe   : > { %s671_s21 = scalar_lea.hbm %s913_s7, 1024  ;;  %s675_s29 = scalar_lea.hbm %s969_s3, 4096 }
  0xff   : > { %p672_p10 = scmp.ne.s32.totalorder %s913_s7, %s671_s21  ;;  %p676_p13 = scmp.lt.s32.totalorder %s913_s7, %s969_s3 }
 0x100   : > { %p677_p0 = scmp.lt.s32.totalorder %s675_s29, %s671_s21 }
 0x101   : > { %p673_p11 = pnand %p672_p10, %p836_p8 }
 0x102   : > { %p678_p1 = por %p677_p0, %p676_p13 }
 0x103   : > { %p674_p12 = pneg %p673_p11 }
 0x105   : > { %p679_p2 = pnand %p678_p1, %p674_p12 }
 0x107   : > { %682 = shalt.err (!%p679_p2)
}
 0x108   : > { %s753_s15 = smov 128   ;;  %s754_s6 = smov 256  }
 0x109   : > { %s755_s9 = smov 8  }
 0x10a   : > { %574 = dma.vmem_to_hbm [thread:$0]  (%p836_p8), %s908_s5, 1024, %s913_s7, %s430_s8, %s753_s15, %s754_s6, %s755_s9  }
 0x10b PF: > { %p580_p3 = scmp.ge.s32.totalorder %s749_s19, 2  ;;  %s459_s10 = sand.u32 1, %s721_s12  }
 0x10c   : > { %s460_s11 = scalar_lea.sflag [#allocation4], %s459_s10 }
 0x10d   : > { %p577_p4 = pnand %p580_p3, %p840_p9 }
 0x10f   : > { %p578_p5 = pneg %p577_p4 }
 0x111   : > { %716 = dma.done.wait (%p578_p5), %s460_s11, 1024  }
 0x112   : > { %718 = vsyncadd (%p578_p5), %s460_s11, 4294966272  ;;  %s16_s19 = sadd.s32 1, %s749_s19   ;;  %s973_s12 = smov %s725_s13 }
 0x113   : > { %p13_p6 = scmp.ge.s32.totalorder %s16_s19, 6   ;;  %s974_s13 = smov %s729_s14 }
 0x114   : > { %s975_s14 = smov %s848_s4  ;;  %s976_s15 = smov %s741_s17 }
 0x115   : > { %s977_s16 = smov %s745_s18  ;;  %s978_s17 = smov %s981_s22 }
 0x116   : > { %s979_s18 = smov %s985_s23  ;;  %15 = sbr.rel (!%p13_p6) target bundleno = 5 (0x5), region = 113 }
 0x11b   :  { %465 = vsyncpa [#allocation4], 1 }
 0x11c   :  { %467 = vsyncpa [#allocation4 + $0x1], 1 }

</bundles_post_ra>
